<compile_context>
chip_gen: v7x
topology: tpu7x:2x2x1
jax: 0.10.0
libtpu: 0.0.40
codegen_flags: <defaults>
</compile_context>

<pallas_src>
import functools

import numpy as np
import jax
import jax.numpy as jnp
from jax.experimental import pallas as pl
from jax.experimental.pallas import tpu as pltpu


# ----------------- kernel 1: batch-independent precompute ------------------
def precompute_xall_kernel(u1_ref, v1_ref, w1_ref, g1_ref, ut_ref, xall_ref):
    """One-shot: Xall[(b*d3+c), r] = sig( sum_a sig-core G[a,b,c] * U[r,a] )."""
    f32 = jnp.float32
    U1 = u1_ref[...]          # (d1, c1)
    V1 = v1_ref[...]          # (d2, c2)
    W1 = w1_ref[...]          # (d3, c3)
    G1 = g1_ref[...]          # (c1, c2, c3)
    Ut = ut_ref[...]          # (d1, n_rows_U)

    # Tiny one-time mode-dots (off the batched path; cost irrelevant).
    res = jnp.einsum('ai,ijk->ajk', U1, G1, preferred_element_type=f32)
    res = jax.nn.sigmoid(res)                                   # (d1, c2, c3)
    res = jnp.einsum('bj,ajk->abk', V1, res, preferred_element_type=f32)
    res = jax.nn.sigmoid(res)                                   # (d1, d2, c3)
    G = jnp.einsum('ck,abk->abc', W1, res, preferred_element_type=f32)
    G = jax.nn.sigmoid(G)                                       # (d1, d2, d3)

    # Fold the per-example first matmul + its sigmoid into the precompute:
    # x3[b, c, r] = sum_a G[a,b,c] * Ut[a,r]   →   Xall = sigmoid(x3) flat.
    x3 = jnp.einsum('abc,ar->bcr', G, Ut, preferred_element_type=f32)
    d2, d3, n_u = x3.shape
    xall_ref[...] = jax.nn.sigmoid(x3.reshape(d2 * d3, n_u))    # (d2*d3, n_u)


# ------------------- kernel 2: batched scoring (hot path) ------------------
def ml2_batched_kernel(idx_ref, xall_ref, cvw_ref, out_ref, *, d2, d3, n_v):
    """Per-tile batched scorer.  Batch (TB columns) lives on the lane axis.

    idx  : (3, TB) int32   — rows are (u_idx, v_idx, w_idx) for this tile
    xall : (d2*d3, n_u)    — precomputed sigmoid(G_flat^T @ U^T)
    cvw  : (d2+d3, n_v+n_w)— block-diag([V^T, W^T])
    out  : (1, TB) f32     — lane-dense predictions
    """
    f32 = jnp.float32
    mxu_dtype = xall_ref.dtype
    tb = idx_ref.shape[1]
    n_u = xall_ref.shape[1]
    n_vw = cvw_ref.shape[1]

    uidx = idx_ref[0:1, :]                                       # (1, TB)
    vidx = idx_ref[1:2, :]
    widx = idx_ref[2:3, :]

    # (a) gather columns of Xall via a one-hot MXU dot (no sigmoid needed —
    #     it was folded into the precompute).
    rows_u = jax.lax.broadcasted_iota(jnp.int32, (n_u, tb), 0)
    onehot_u = (rows_u == uidx).astype(mxu_dtype)                # (n_u, TB)
    x_t = jnp.dot(xall_ref[...], onehot_u,
                  preferred_element_type=f32)                    # (d2*d3, TB)

    # (b) combined v/w gather: one block-diagonal MXU push yields [v_t ; w_t].
    rows_vw = jax.lax.broadcasted_iota(jnp.int32, (n_vw, tb), 0)
    onehot_vw = ((rows_vw == vidx) |
                 (rows_vw == (widx + n_v))).astype(mxu_dtype)    # (n_v+n_w, TB)
    vw_t = jnp.dot(cvw_ref[...], onehot_vw,
                   preferred_element_type=f32)                   # (d2+d3, TB)
    v_t = vw_t[0:d2, :]                                          # (d2, TB)
    w_t = vw_t[d2:d2 + d3, :]                                    # (d3, TB)

    # (c) g_t[c, n] = sigmoid(sum_b v[n,b] * x[n,b,c]) — pure VPU work with
    #     sublane-aligned static slices (rows b*d3:(b+1)*d3 of x_t).
    acc = v_t[0:1, :] * x_t[0:d3, :]
    for b in range(1, d2):
        acc = acc + v_t[b:b + 1, :] * x_t[b * d3:(b + 1) * d3, :]
    g_t = jax.nn.sigmoid(acc)                                    # (d3, TB)

    # (d) pred[n] = sum_c w[n,c] * g[n,c] — naturally lane-dense (1, TB) store.
    out_ref[...] = jnp.sum(w_t * g_t, axis=0, keepdims=True)


# --------------------------------- wrapper ----------------------------------
def ml2_forward(u_idx, v_idx, w_idx, params, block_b=512,
                mxu_dtype=jnp.float32):
    """Forward pass of ML2.  Returns (B,) predictions."""
    U, V, W = params['U'], params['V'], params['W']
    U1, V1, W1, G1 = params['U1'], params['V1'], params['W1'], params['G1']
    d1, d2, d3 = U.shape[1], V.shape[1], W.shape[1]
    n_u, n_v, n_w = U.shape[0], V.shape[0], W.shape[0]

    vmem = pl.BlockSpec(memory_space=pltpu.MemorySpace.VMEM)

    # 1) Hoisted, batch-independent precompute (runs once).
    Xall = pl.pallas_call(
        precompute_xall_kernel,
        out_shape=jax.ShapeDtypeStruct((d2 * d3, n_u), jnp.float32),
        in_specs=[vmem] * 5,
        out_specs=vmem,
    )(U1, V1, W1, G1, U.T)

    # Block-diagonal combined v/w table (wrapper-side, tiny, free).
    Cvw = jnp.zeros((d2 + d3, n_v + n_w), jnp.float32)
    Cvw = Cvw.at[:d2, :n_v].set(V.T)
    Cvw = Cvw.at[d2:, n_v:].set(W.T)

    # Optional bf16 MXU feed (v6e/v7x); keep f32 accumulation + f32 sigmoids.
    Xall_mxu = Xall.astype(mxu_dtype)
    Cvw_mxu = Cvw.astype(mxu_dtype)

    # 2) Batched scoring kernel — batch padded to a multiple of the lane tile.
    B = int(u_idx.reshape(-1).shape[0])
    block_b = max(128, ((block_b + 127) // 128) * 128)
    B_pad128 = ((B + 127) // 128) * 128
    TB = min(block_b, B_pad128)           # don't over-pad tiny batches
    B_pad = ((B + TB - 1) // TB) * TB

    def prep_idx(idx):
        idx = idx.reshape(-1).astype(jnp.int32)
        return jnp.pad(idx, (0, B_pad - B))     # pad rows use index 0; sliced off

    idx = jnp.stack([prep_idx(u_idx), prep_idx(v_idx), prep_idx(w_idx)],
                    axis=0)                      # (3, B_pad): one DMA per step

    pred = pl.pallas_call(
        functools.partial(ml2_batched_kernel, d2=d2, d3=d3, n_v=n_v),
        out_shape=jax.ShapeDtypeStruct((1, B_pad), jnp.float32),
        grid=(B_pad // TB,),
        in_specs=[
            pl.BlockSpec((3, TB), lambda i: (0, i)),
            pl.BlockSpec(Xall_mxu.shape, lambda i: (0, 0)),
            pl.BlockSpec(Cvw_mxu.shape, lambda i: (0, 0)),
        ],
        out_specs=pl.BlockSpec((1, TB), lambda i: (0, i)),
        compiler_params=pltpu.CompilerParams(
            dimension_semantics=("parallel",)),
    )(idx, Xall_mxu, Cvw_mxu)

    return pred[0, :B]                    # == torch.squeeze(pred) for B > 1


# --------------------------- reference (checking) --------------------------
def ml2_reference(u_idx, v_idx, w_idx, params):
    U, V, W = params['U'], params['V'], params['W']
    U1, V1, W1, G1 = params['U1'], params['V1'], params['W1'], params['G1']
    u = U[u_idx.reshape(-1)]
    v = V[v_idx.reshape(-1)]
    w = W[w_idx.reshape(-1)]
    res = jax.nn.sigmoid(jnp.einsum('ai,ijk->ajk', U1, G1))
    res = jax.nn.sigmoid(jnp.einsum('bj,ajk->abk', V1, res))
    G = jax.nn.sigmoid(jnp.einsum('ck,abk->abc', W1, res))
    x = jax.nn.sigmoid(jnp.einsum('na,abc->nbc', u, G))
    g = jax.nn.sigmoid(jnp.einsum('nb,nbc->nc', v, x))
    return jnp.sum(w * g, axis=1)


# ------------------------------- param init --------------------------------
def xavier_normal(key, shape):
    fan_out, fan_in = shape[0], shape[1]
    std = float(np.sqrt(2.0 / (fan_in + fan_out)))
    return std * jax.random.normal(key, shape, dtype=jnp.float32)


def init_params(key, shape, rank, core):
    ks = jax.random.split(key, 7)
    # NOTE: torch's padding_idx=0 rows are overwritten by xavier_normal_ in
    # ML2.init(), so no special-casing of row 0 is required here.
    return {
        'U1': xavier_normal(ks[0], (rank[0], core[0])),
        'V1': xavier_normal(ks[1], (rank[1], core[1])),
        'W1': xavier_normal(ks[2], (rank[2], core[2])),
        'U':  xavier_normal(ks[3], (shape[0], rank[0])),
        'V':  xavier_normal(ks[4], (shape[1], rank[1])),
        'W':  xavier_normal(ks[5], (shape[2], rank[2])),
        'G1': jax.random.uniform(ks[6], (core[0], core[1], core[2]),
                                 dtype=jnp.float32, minval=-1.0, maxval=1.0),
    }


# ---------------------------------- main ------------------------------------
if __name__ == "__main__":
    shape = (16, 16, 16)   # embedding table sizes (tensor dims)
    rank = (8, 8, 8)       # d1, d2, d3
    core = (4, 4, 4)       # Tucker core dims
    B = 8                  # batch of (i, j, k) index triples

    key = jax.random.PRNGKey(0)
    pkey, ikey = jax.random.split(key)
    params = init_params(pkey, shape, rank, core)

    k1, k2, k3 = jax.random.split(ikey, 3)
    u_idx = jax.random.randint(k1, (B,), 0, shape[0])
    v_idx = jax.random.randint(k2, (B,), 0, shape[1])
    w_idx = jax.random.randint(k3, (B,), 0, shape[2])

    forward = jax.jit(lambda ui, vi, wi: ml2_forward(ui, vi, wi, params))
    pred = jax.block_until_ready(forward(u_idx, v_idx, w_idx))

    ref = jax.block_until_ready(ml2_reference(u_idx, v_idx, w_idx, params))
    np.testing.assert_allclose(np.asarray(pred), np.asarray(ref),
                               rtol=1e-5, atol=1e-5)
    print("KERNEL_OK")
</pallas_src>

<mosaic_0001>
module attributes {stable_mosaic.version = 11 : i64} {
  func.func @precompute_xall_kernel(%arg0: memref<8x4xf32, #tpu.memory_space<vmem>>, %arg1: memref<8x4xf32, #tpu.memory_space<vmem>>, %arg2: memref<8x4xf32, #tpu.memory_space<vmem>>, %arg3: memref<4x4x4xf32, #tpu.memory_space<vmem>>, %arg4: memref<8x16xf32, #tpu.memory_space<vmem>>, %arg5: memref<64x16xf32, #tpu.memory_space<vmem>>) attributes {dimension_semantics = [], scalar_prefetch = 0 : i64, scratch_operands = 0 : i64, tpu.core_type = #tpu.core_type<tc>} {
    %c0 = arith.constant 0 : index
    %c0_0 = arith.constant 0 : index
    %0 = vector.load %arg0[%c0, %c0_0] : memref<8x4xf32, #tpu.memory_space<vmem>>, vector<8x4xf32>
    %c0_1 = arith.constant 0 : index
    %c0_2 = arith.constant 0 : index
    %1 = vector.load %arg1[%c0_1, %c0_2] : memref<8x4xf32, #tpu.memory_space<vmem>>, vector<8x4xf32>
    %c0_3 = arith.constant 0 : index
    %c0_4 = arith.constant 0 : index
    %2 = vector.load %arg2[%c0_3, %c0_4] : memref<8x4xf32, #tpu.memory_space<vmem>>, vector<8x4xf32>
    %c0_5 = arith.constant 0 : index
    %c0_6 = arith.constant 0 : index
    %c0_7 = arith.constant 0 : index
    %3 = vector.load %arg3[%c0_5, %c0_6, %c0_7] : memref<4x4x4xf32, #tpu.memory_space<vmem>>, vector<4x4x4xf32>
    %c0_8 = arith.constant 0 : index
    %c0_9 = arith.constant 0 : index
    %4 = vector.load %arg4[%c0_8, %c0_9] : memref<8x16xf32, #tpu.memory_space<vmem>>, vector<8x16xf32>
    "tpu.trace_start"() <{level = 10 : i32, message = "ai,ijk->ajk"}> : () -> ()
    %cst = arith.constant dense<0.000000e+00> : vector<8x4x4xf32>
    %5 = tpu.matmul %0, %3, %cst {dimension_numbers = #tpu.dot_dimension_numbers<[1], [0], [0], [1, 2], [0, 0, 1, 1, 1, 2], [], []>} : vector<8x4xf32>, vector<4x4x4xf32>, vector<8x4x4xf32> -> vector<8x4x4xf32>
    "tpu.trace_stop"() : () -> ()
    %6 = arith.negf %5 : vector<8x4x4xf32>
    %7 = math.exp %6 : vector<8x4x4xf32>
    %cst_10 = arith.constant 1.000000e+00 : f32
    %8 = vector.broadcast %cst_10 : f32 to vector<8x4x4xf32>
    %9 = arith.addf %8, %7 : vector<8x4x4xf32>
    %10 = arith.divf %8, %9 : vector<8x4x4xf32>
    "tpu.trace_start"() <{level = 10 : i32, message = "bj,ajk->abk"}> : () -> ()
    %cst_11 = arith.constant dense<0.000000e+00> : vector<8x4x8xf32>
    %11 = tpu.matmul %10, %1, %cst_11 {dimension_numbers = #tpu.dot_dimension_numbers<[1], [1], [0, 2], [0], [0, 0, 0, 2, 1, 0], [], []>} : vector<8x4x4xf32>, vector<8x4xf32>, vector<8x4x8xf32> -> vector<8x4x8xf32>
    %12 = tpu.transpose %11, [0, 2, 1] : vector<8x4x8xf32> -> vector<8x8x4xf32>
    "tpu.trace_stop"() : () -> ()
    %13 = arith.negf %12 : vector<8x8x4xf32>
    %14 = math.exp %13 : vector<8x8x4xf32>
    %cst_12 = arith.constant 1.000000e+00 : f32
    %15 = vector.broadcast %cst_12 : f32 to vector<8x8x4xf32>
    %16 = arith.addf %15, %14 : vector<8x8x4xf32>
    %17 = arith.divf %15, %16 : vector<8x8x4xf32>
    "tpu.trace_start"() <{level = 10 : i32, message = "ck,abk->abc"}> : () -> ()
    %cst_13 = arith.constant dense<0.000000e+00> : vector<8x8x8xf32>
    %18 = tpu.matmul %17, %2, %cst_13 {dimension_numbers = #tpu.dot_dimension_numbers<[2], [1], [0, 1], [0], [0, 0, 0, 1, 1, 0], [], []>} : vector<8x8x4xf32>, vector<8x4xf32>, vector<8x8x8xf32> -> vector<8x8x8xf32>
    "tpu.trace_stop"() : () -> ()
    %19 = arith.negf %18 : vector<8x8x8xf32>
    %20 = math.exp %19 : vector<8x8x8xf32>
    %cst_14 = arith.constant 1.000000e+00 : f32
    %21 = vector.broadcast %cst_14 : f32 to vector<8x8x8xf32>
    %22 = arith.addf %21, %20 : vector<8x8x8xf32>
    %23 = arith.divf %21, %22 : vector<8x8x8xf32>
    "tpu.trace_start"() <{level = 10 : i32, message = "abc,ar->bcr"}> : () -> ()
    %cst_15 = arith.constant dense<0.000000e+00> : vector<8x8x16xf32>
    %24 = tpu.matmul %23, %4, %cst_15 {dimension_numbers = #tpu.dot_dimension_numbers<[0], [0], [1, 2], [1], [0, 1, 0, 2, 1, 1], [], []>} : vector<8x8x8xf32>, vector<8x16xf32>, vector<8x8x16xf32> -> vector<8x8x16xf32>
    "tpu.trace_stop"() : () -> ()
    %25 = vector.shape_cast %24 : vector<8x8x16xf32> to vector<64x16xf32>
    %26 = arith.negf %25 : vector<64x16xf32>
    %27 = math.exp %26 : vector<64x16xf32>
    %cst_16 = arith.constant 1.000000e+00 : f32
    %28 = vector.broadcast %cst_16 : f32 to vector<64x16xf32>
    %29 = arith.addf %28, %27 : vector<64x16xf32>
    %30 = arith.divf %28, %29 : vector<64x16xf32>
    %c0_17 = arith.constant 0 : index
    %c0_18 = arith.constant 0 : index
    %31 = vector.load %arg5[%c0_17, %c0_18] : memref<64x16xf32, #tpu.memory_space<vmem>>, vector<64x16xf32>
    tpu.vector_store %arg5[%c0_17, %c0_18], %30 {strides = array<i32>} : memref<64x16xf32, #tpu.memory_space<vmem>>, vector<64x16xf32>,
    return
  }
}

module attributes {stable_mosaic.version = 11 : i64} {
  func.func @ml2_batched_kernel(%arg0: i32, %arg1: memref<3x128xi32, #tpu.memory_space<vmem>>, %arg2: memref<64x16xf32, #tpu.memory_space<vmem>>, %arg3: memref<16x32xf32, #tpu.memory_space<vmem>>, %arg4: memref<1x128xf32, #tpu.memory_space<vmem>>) attributes {dimension_semantics = [#tpu.dimension_semantics<parallel>], iteration_bounds = array<i64: 1>, scalar_prefetch = 0 : i64, scratch_operands = 0 : i64, tpu.core_type = #tpu.core_type<tc>, window_params = [{transform_indices = @transform_0, window_bounds = array<i64: 3, 128>}, {pipeline_mode = #tpu.pipeline_mode<synchronous>, transform_indices = @transform_1, window_bounds = array<i64: 64, 16>}, {pipeline_mode = #tpu.pipeline_mode<synchronous>, transform_indices = @transform_2, window_bounds = array<i64: 16, 32>}, {transform_indices = @transform_3, window_bounds = array<i64: 1, 128>}]} {
    %c0 = arith.constant 0 : index
    %c0_0 = arith.constant 0 : index
    %0 = vector.load %arg1[%c0, %c0_0] : memref<3x128xi32, #tpu.memory_space<vmem>>, vector<1x128xi32>
    %c1 = arith.constant 1 : index
    %c0_1 = arith.constant 0 : index
    %1 = vector.load %arg1[%c1, %c0_1] : memref<3x128xi32, #tpu.memory_space<vmem>>, vector<1x128xi32>
    %c2 = arith.constant 2 : index
    %c0_2 = arith.constant 0 : index
    %2 = vector.load %arg1[%c2, %c0_2] : memref<3x128xi32, #tpu.memory_space<vmem>>, vector<1x128xi32>
    %3 = tpu.iota {dimensions = array<i32: 0>} : vector<16x128xi32>
    %4 = vector.broadcast %0 : vector<1x128xi32> to vector<16x128xi32>
    %5 = arith.cmpi eq, %3, %4 : vector<16x128xi32>
    %6 = arith.extui %5 : vector<16x128xi1> to vector<16x128xi32>
    %7 = arith.sitofp %6 : vector<16x128xi32> to vector<16x128xf32>
    %c0_3 = arith.constant 0 : index
    %c0_4 = arith.constant 0 : index
    %8 = vector.load %arg2[%c0_3, %c0_4] : memref<64x16xf32, #tpu.memory_space<vmem>>, vector<64x16xf32>
    %cst = arith.constant dense<0.000000e+00> : vector<64x128xf32>
    %9 = tpu.matmul %8, %7, %cst {dimension_numbers = #tpu.dot_dimension_numbers<[1], [0], [0], [1], [0, 0, 1, 1], [], []>} : vector<64x16xf32>, vector<16x128xf32>, vector<64x128xf32> -> vector<64x128xf32>
    %10 = tpu.iota {dimensions = array<i32: 0>} : vector<32x128xi32>
    %11 = vector.broadcast %1 : vector<1x128xi32> to vector<32x128xi32>
    %12 = arith.cmpi eq, %10, %11 : vector<32x128xi32>
    %c16_i32 = arith.constant 16 : i32
    %13 = vector.broadcast %c16_i32 : i32 to vector<1x128xi32>
    %14 = arith.addi %2, %13 : vector<1x128xi32>
    %15 = vector.broadcast %14 : vector<1x128xi32> to vector<32x128xi32>
    %16 = arith.cmpi eq, %10, %15 : vector<32x128xi32>
    %17 = arith.ori %12, %16 : vector<32x128xi1>
    %18 = arith.extui %17 : vector<32x128xi1> to vector<32x128xi32>
    %19 = arith.sitofp %18 : vector<32x128xi32> to vector<32x128xf32>
    %c0_5 = arith.constant 0 : index
    %c0_6 = arith.constant 0 : index
    %20 = vector.load %arg3[%c0_5, %c0_6] : memref<16x32xf32, #tpu.memory_space<vmem>>, vector<16x32xf32>
    %cst_7 = arith.constant dense<0.000000e+00> : vector<16x128xf32>
    %21 = tpu.matmul %20, %19, %cst_7 {dimension_numbers = #tpu.dot_dimension_numbers<[1], [0], [0], [1], [0, 0, 1, 1], [], []>} : vector<16x32xf32>, vector<32x128xf32>, vector<16x128xf32> -> vector<16x128xf32>
    %22 = vector.extract_strided_slice %21 {offsets = [0, 0], sizes = [8, 128], strides = [1, 1]} : vector<16x128xf32> to vector<8x128xf32>
    %23 = vector.extract_strided_slice %21 {offsets = [8, 0], sizes = [8, 128], strides = [1, 1]} : vector<16x128xf32> to vector<8x128xf32>
    %24 = vector.extract_strided_slice %22 {offsets = [0, 0], sizes = [1, 128], strides = [1, 1]} : vector<8x128xf32> to vector<1x128xf32>
    %25 = vector.extract_strided_slice %9 {offsets = [0, 0], sizes = [8, 128], strides = [1, 1]} : vector<64x128xf32> to vector<8x128xf32>
    %26 = vector.broadcast %24 : vector<1x128xf32> to vector<8x128xf32>
    %27 = arith.mulf %26, %25 : vector<8x128xf32>
    %28 = vector.extract_strided_slice %22 {offsets = [1, 0], sizes = [1, 128], strides = [1, 1]} : vector<8x128xf32> to vector<1x128xf32>
    %29 = vector.extract_strided_slice %9 {offsets = [8, 0], sizes = [8, 128], strides = [1, 1]} : vector<64x128xf32> to vector<8x128xf32>
    %30 = vector.broadcast %28 : vector<1x128xf32> to vector<8x128xf32>
    %31 = arith.mulf %30, %29 : vector<8x128xf32>
    %32 = arith.addf %27, %31 : vector<8x128xf32>
    %33 = vector.extract_strided_slice %22 {offsets = [2, 0], sizes = [1, 128], strides = [1, 1]} : vector<8x128xf32> to vector<1x128xf32>
    %34 = vector.extract_strided_slice %9 {offsets = [16, 0], sizes = [8, 128], strides = [1, 1]} : vector<64x128xf32> to vector<8x128xf32>
    %35 = vector.broadcast %33 : vector<1x128xf32> to vector<8x128xf32>
    %36 = arith.mulf %35, %34 : vector<8x128xf32>
    %37 = arith.addf %32, %36 : vector<8x128xf32>
    %38 = vector.extract_strided_slice %22 {offsets = [3, 0], sizes = [1, 128], strides = [1, 1]} : vector<8x128xf32> to vector<1x128xf32>
    %39 = vector.extract_strided_slice %9 {offsets = [24, 0], sizes = [8, 128], strides = [1, 1]} : vector<64x128xf32> to vector<8x128xf32>
    %40 = vector.broadcast %38 : vector<1x128xf32> to vector<8x128xf32>
    %41 = arith.mulf %40, %39 : vector<8x128xf32>
    %42 = arith.addf %37, %41 : vector<8x128xf32>
    %43 = vector.extract_strided_slice %22 {offsets = [4, 0], sizes = [1, 128], strides = [1, 1]} : vector<8x128xf32> to vector<1x128xf32>
    %44 = vector.extract_strided_slice %9 {offsets = [32, 0], sizes = [8, 128], strides = [1, 1]} : vector<64x128xf32> to vector<8x128xf32>
    %45 = vector.broadcast %43 : vector<1x128xf32> to vector<8x128xf32>
    %46 = arith.mulf %45, %44 : vector<8x128xf32>
    %47 = arith.addf %42, %46 : vector<8x128xf32>
    %48 = vector.extract_strided_slice %22 {offsets = [5, 0], sizes = [1, 128], strides = [1, 1]} : vector<8x128xf32> to vector<1x128xf32>
    %49 = vector.extract_strided_slice %9 {offsets = [40, 0], sizes = [8, 128], strides = [1, 1]} : vector<64x128xf32> to vector<8x128xf32>
    %50 = vector.broadcast %48 : vector<1x128xf32> to vector<8x128xf32>
    %51 = arith.mulf %50, %49 : vector<8x128xf32>
    %52 = arith.addf %47, %51 : vector<8x128xf32>
    %53 = vector.extract_strided_slice %22 {offsets = [6, 0], sizes = [1, 128], strides = [1, 1]} : vector<8x128xf32> to vector<1x128xf32>
    %54 = vector.extract_strided_slice %9 {offsets = [48, 0], sizes = [8, 128], strides = [1, 1]} : vector<64x128xf32> to vector<8x128xf32>
    %55 = vector.broadcast %53 : vector<1x128xf32> to vector<8x128xf32>
    %56 = arith.mulf %55, %54 : vector<8x128xf32>
    %57 = arith.addf %52, %56 : vector<8x128xf32>
    %58 = vector.extract_strided_slice %22 {offsets = [7, 0], sizes = [1, 128], strides = [1, 1]} : vector<8x128xf32> to vector<1x128xf32>
    %59 = vector.extract_strided_slice %9 {offsets = [56, 0], sizes = [8, 128], strides = [1, 1]} : vector<64x128xf32> to vector<8x128xf32>
    %60 = vector.broadcast %58 : vector<1x128xf32> to vector<8x128xf32>
    %61 = arith.mulf %60, %59 : vector<8x128xf32>
    %62 = arith.addf %57, %61 : vector<8x128xf32>
    %63 = arith.negf %62 : vector<8x128xf32>
    %64 = math.exp %63 : vector<8x128xf32>
    %cst_8 = arith.constant 1.000000e+00 : f32
    %65 = vector.broadcast %cst_8 : f32 to vector<8x128xf32>
    %66 = arith.addf %65, %64 : vector<8x128xf32>
    %67 = arith.divf %65, %66 : vector<8x128xf32>
    %68 = arith.mulf %23, %67 : vector<8x128xf32>
    %cst_9 = arith.constant dense<0.000000e+00> : vector<128xf32>
    %69 = vector.multi_reduction <add>, %68, %cst_9 [0] : vector<8x128xf32> to vector<128xf32>
    %70 = vector.shape_cast %69 : vector<128xf32> to vector<1x128xf32>
    %c0_10 = arith.constant 0 : index
    %c0_11 = arith.constant 0 : index
    %71 = vector.load %arg4[%c0_10, %c0_11] : memref<1x128xf32, #tpu.memory_space<vmem>>, vector<1x128xf32>
    tpu.vector_store %arg4[%c0_10, %c0_11], %70 {strides = array<i32>} : memref<1x128xf32, #tpu.memory_space<vmem>>, vector<1x128xf32>,
    return
  }
  func.func @transform_0(%arg0: i32) -> (i32, i32) {
    %c0_i32 = arith.constant 0 : i32
    %c0_i32_0 = arith.constant 0 : i32
    return %c0_i32, %arg0 : i32, i32
  }
  func.func @transform_1(%arg0: i32) -> (i32, i32) {
    %c0_i32 = arith.constant 0 : i32
    %c0_i32_0 = arith.constant 0 : i32
    %c0_i32_1 = arith.constant 0 : i32
    return %c0_i32, %c0_i32_0 : i32, i32
  }
  func.func @transform_2(%arg0: i32) -> (i32, i32) {
    %c0_i32 = arith.constant 0 : i32
    %c0_i32_0 = arith.constant 0 : i32
    %c0_i32_1 = arith.constant 0 : i32
    return %c0_i32, %c0_i32_0 : i32, i32
  }
  func.func @transform_3(%arg0: i32) -> (i32, i32) {
    %c0_i32 = arith.constant 0 : i32
    %c0_i32_0 = arith.constant 0 : i32
    return %c0_i32, %arg0 : i32, i32
  }
}

</mosaic_0001>

<bundles_post_ra>
// kernel: _lambda_.3
= control target key start
LH: loop header
LB: loop body
LE: loop exit
PB: predicated region body
PF: predicated region fallthrough
CT: control target
= control target key end

     0   :  { %v17_v0 = vlaneseq  ;;  %vm38_vm0 = vcmask 130048   ;;  %vm201_vm1 = vcmask 261120   ;;  %v433_v13 = vmov 1.0|1.0   ;;  %s522_s0 = inlined_call_operand.vmem [shape: s32[3,128], index: 0, kind: input, shape index: {}]   ;;  %s523_s1 = inlined_call_operand.vmem [shape: f32[64,16], index: 1, kind: input, shape index: {}]   ;;  %s524_s2 = inlined_call_operand.vmem [shape: f32[16,32], index: 2, kind: input, shape index: {}]   ;;  %s525_s3 = inlined_call_operand.vmem [shape: f32[1,128], index: 3, kind: output, shape index: {}]  }
   0x1   :  { %v348_v1 = vld [vmem:[%s522_s0] ss:$0 sm:$0xff]  ;;  %v16_v2 = vld [vmem:[%s522_s0 + $0x2] sm:$0x1]  ;;  %v361_v6 = vld [vmem:[%s522_s0 + $0x1] ss:$0 sm:$0xff] }
   0x2   :  { %v30_v3 = vld [vmem:[%s523_s1] sm:$0xff]  ;;  %v463_v4 = vshrl.u32 %v17_v0, 7  ;;  %v178_v5 = vadd.s32 16, %v16_v2  ;;  %v31_v14 = vld [vmem:[%s523_s1 + $0x8] sm:$0xff]  ;;  %v32_v15 = vld [vmem:[%s523_s1 + $0x10] sm:$0xff] }
   0x3   :  { %393 = vmatprep.mubr.msk.f32.mxu0 %vm38_vm0, %v30_v3  ;;  %v199_v7 = vld [vmem:[%s524_s2] sm:$0xff]  ;;  %v33_v16 = vld [vmem:[%s523_s1 + $0x18] sm:$0xff]  ;;  %v200_v18 = vld [vmem:[%s524_s2 + $0x8] sm:$0xff] }
   0x4   :  { %v19_v8 = vadd.s32 8, %v463_v4  ;;  %vm24_vm2 = vcmp.eq.s32.totalorder %v463_v4, %v348_v1  ;;  %v181_v9 = vsub.s32 0, %v463_v4  ;;  %413 = vmatprep.mubr.msk.f32.mxu1 %vm201_vm1, %v199_v7  ;;  %v168_v10 = vadd.s32 16, %v463_v4  ;;  %v34_v17 = vld [vmem:[%s523_s1 + $0x20] sm:$0xff]  ;;  %v35_v19 = vld [vmem:[%s523_s1 + $0x28] sm:$0xff]  ;;  %v36_v20 = vld [vmem:[%s523_s1 + $0x30] sm:$0xff] }
   0x5   :  { %vm174_vm4 = vcmp.eq.s32.totalorder %v463_v4, %v361_v6  ;;  %v169_v12 = vadd.s32 24, %v463_v4  ;;  %v37_v21 = vld [vmem:[%s523_s1 + $0x38] sm:$0xff]  ;;  %v314_v26 = vsub.s32 5, %v463_v4  ;;  %v290_v27 = vsub.s32 1, %v463_v4 }
   0x6   :  { %vm25_vm3 = vcmp.eq.s32.totalorder %v19_v8, %v348_v1  ;;  %v182_v11 = vrot.slane %v178_v5, %v181_v9  ;;  %vm175_vm6 = vcmp.eq.s32.totalorder %v19_v8, %v361_v6  ;;  %vm176_vm10 = vcmp.eq.s32.totalorder %v168_v10, %v361_v6 }
   0x7   :  { %vm416_vm5 = vmpackc.low %vm25_vm3, %vm24_vm2  ;;  %vm177_vm13 = vcmp.eq.s32.totalorder %v169_v12, %v361_v6  ;;  %v296_v28 = vsub.s32 2, %v463_v4  ;;  %v302_v29 = vsub.s32 3, %v463_v4  ;;  %v308_v30 = vsub.s32 4, %v463_v4 }
   0x8   :  { %417 = vmatprep.subr.msk.bf16.mxu0 %vm416_vm5, %v433_v13  ;;  %vm183_vm7 = vcmp.eq.s32.totalorder %v463_v4, %v182_v11  ;;  %vm184_vm8 = vcmp.eq.s32.totalorder %v19_v8, %v182_v11  ;;  %vm185_vm11 = vcmp.eq.s32.totalorder %v168_v10, %v182_v11  ;;  %vm186_vm14 = vcmp.eq.s32.totalorder %v169_v12, %v182_v11 }
   0x9   :  { %419 = vmatpush3.bf16.msk.msra.mxu0 %vm416_vm5, %v433_v13  ;;  %vm187_vm9 = vmor %vm174_vm4, %vm183_vm7  ;;  %v326_v31 = vsub.s32 7, %v463_v4  ;;  %v320_v32 = vsub.s32 6, %v463_v4 }
   0xa   :  { %vm188_vm12 = vmor %vm175_vm6, %vm184_vm8 }
   0xb   :  { %vm420_vm15 = vmpackc.low %vm188_vm12, %vm187_vm9 }
   0xc   :  { %421 = vmatprep.subr.msk.bf16.mxu1 %vm420_vm15, %v433_v13  ;;  %394 = vmatmul.mubr.msk.f32.vlgmr.msra.gmra.mrb[0].mxu0 %vm38_vm0, %v31_v14  ;;  %vm189_vm2 = vmor %vm176_vm10, %vm185_vm11 }
   0xd   :  { %423 = vmatpush3.bf16.msk.msra.mxu1 %vm420_vm15, %v433_v13  ;;  %396 = vmatprep.mubr.msk.f32.mxu0 %vm38_vm0, %v32_v15  ;;  %vm190_vm3 = vmor %vm177_vm13, %vm186_vm14 }
   0xe   :  { %vm424_vm4 = vmpackc.low %vm190_vm3, %vm189_vm2 }
   0xf   :  { %425 = vmatprep.subr.msk.bf16.mxu1 %vm424_vm4, %v433_v13 }
  0x10   :  { %397 = vmatmul.mubr.msk.f32.gmra.mrb[2].mxu0 %vm38_vm0, %v33_v16 }
  0x11   :  { %427 = vmatpush3.bf16.msk.msra.mxu1 %vm424_vm4, %v433_v13  ;;  %399 = vmatprep.mubr.msk.f32.mxu0 %vm38_vm0, %v34_v17 }
  0x14   :  { %414 = vmatmul.mubr.msk.f32.vlgmr.msra.gmra.mrb[0].mxu1 %vm201_vm1, %v200_v18  ;;  %400 = vmatmul.mubr.msk.f32.gmra.mrb[4].mxu0 %vm38_vm0, %v35_v19 }
  0x15   :  { %402 = vmatprep.mubr.msk.f32.mxu0 %vm38_vm0, %v36_v20 }
  0x18   :  { %403 = vmatmul.mubr.msk.f32.gmra.mrb[6].mxu0 %vm38_vm0, %v37_v21 }
  0xdf   :  { %v395_v22 = vpop.f32.mrb[0].mxu0 }
  0xe0   :  { %v129_v23 = vpop.f32.mrb[1].mxu0 }
  0xe3   :  { %v398_v24 = vpop.f32.mrb[2].mxu0 }
  0xe4   :  { %v139_v25 = vpop.f32.mrb[3].mxu0 }
  0xe7   :  { %v415_v33 = vpop.f32.mrb[0].mxu1  ;;  %v401_v34 = vpop.f32.mrb[4].mxu0 }
  0xe8   :  { %v274_v35 = vpop.f32.mrb[1].mxu1  ;;  %v149_v36 = vpop.f32.mrb[5].mxu0 }
  0xe9   :  { %v315_v37 = vrot.slane %v274_v35, %v314_v26  ;;  %v286_v38 = vrot.slane %v274_v35, %v181_v9  ;;  %v291_v39 = vrot.slane %v274_v35, %v290_v27  ;;  %v297_v40 = vrot.slane %v274_v35, %v296_v28 }
  0xea   :  { %v303_v41 = vrot.slane %v274_v35, %v302_v29  ;;  %v309_v42 = vrot.slane %v274_v35, %v308_v30  ;;  %v327_v43 = vrot.slane %v274_v35, %v326_v31  ;;  %v321_v44 = vrot.slane %v274_v35, %v320_v32 }
  0xeb   :  { %v316_v45 = vmul.f32 %v401_v34, %v315_v37  ;;  %v287_v46 = vmul.f32 %v286_v38, %v129_v23  ;;  %v292_v47 = vmul.f32 %v395_v22, %v291_v39  ;;  %v298_v48 = vmul.f32 %v297_v40, %v139_v25  ;;  %v404_v49 = vpop.f32.mrb[6].mxu0 }
  0xec   :  { %v304_v50 = vmul.f32 %v398_v24, %v303_v41  ;;  %v310_v51 = vmul.f32 %v309_v42, %v149_v36  ;;  %v328_v52 = vmul.f32 %v404_v49, %v327_v43  ;;  %v159_v53 = vpop.f32.mrb[7].mxu0 }
  0xed   :  { %v293_v54 = vadd.f32 %v292_v47, %v287_v46  ;;  %v322_v55 = vmul.f32 %v321_v44, %v159_v53 }
  0xef   :  { %v299_v56 = vadd.f32 %v298_v48, %v293_v54 }
  0xf1   :  { %v305_v57 = vadd.f32 %v304_v50, %v299_v56 }
  0xf3   :  { %v311_v58 = vadd.f32 %v310_v51, %v305_v57 }
  0xf5   :  { %v317_v59 = vadd.f32 %v316_v45, %v311_v58 }
  0xf7   :  { %v323_v60 = vadd.f32 %v322_v55, %v317_v59 }
  0xf9   :  { %v329_v61 = vadd.f32 %v328_v52, %v323_v60 }
  0xfb   :  { %v372_v62 = vmul.f32 -1.442695, %v329_v61 }
  0xfd   :  { %429 = vpow2.f32 %v372_v62 }
 0x107   :  { %v430_v63 = vpop.eup %429 }
 0x108   :  { %v333_v0 = vadd.f32 1.0, %v430_v63 }
 0x10a   :  { %431 = vrcp.f32 %v333_v0 }
 0x114   :  { %v432_v1 = vpop.eup %431 }
 0x115   :  { %v336_v2 = vmul.f32 %v432_v1, %v415_v33 }
 0x117   :  { %v337_v3 = vrot.slane %v336_v2, 4 }
 0x119   :  { %v338_v4 = vadd.f32 %v337_v3, %v336_v2 }
 0x11b   :  { %v339_v5 = vrot.slane %v338_v4, 2 }
 0x11d   :  { %v340_v6 = vadd.f32 %v339_v5, %v338_v4 }
 0x11f   :  { %v341_v7 = vrot.slane %v340_v6, 1 }
 0x121   :  { %v342_v8 = vadd.f32 %v341_v7, %v340_v6 }
 0x123   :  { %343 = vst [vmem:[%s525_s3] sm:$0x1] %v342_v8 }

// kernel: _lambda_.2
= control target key start
LH: loop header
LB: loop body
LE: loop exit
PB: predicated region body
PF: predicated region fallthrough
CT: control target
= control target key end

     0   :  { %10 = vsyncpa [#allocation3], 0  ;;  %s1892_s18 = smov [#allocation2]   ;;  %s2079_s0 = inlined_call_operand.hbm [shape: f32[8,4], index: 0, kind: input, shape index: {}]   ;;  %s2080_s1 = inlined_call_operand.vmem [shape: f32[8,4], index: 1, kind: input, shape index: {}]   ;;  %s2081_s2 = inlined_call_operand.vmem [shape: f32[8,4], index: 2, kind: input, shape index: {}]   ;;  %s2082_s3 = inlined_call_operand.vmem [shape: f32[4,4,4], index: 3, kind: input, shape index: {}]   ;;  %s2083_s4 = inlined_call_operand.vmem [shape: f32[8,16], index: 4, kind: input, shape index: {}]   ;;  %s2084_s5 = inlined_call_operand.vmem [shape: f32[64,16], index: 5, kind: output, shape index: {}]  }
   0x1   :  { %s17_s19 = sshll.u32 %s1892_s18, 4  ;;  %s1868_s22 = scalar_lea.hbm %s2079_s0, 128  ;;  %s18_s19 = int_to_ptr.vmem [resolvable:$true] %s17_s19 }
   0x2   :  { %p1869_p0 = scmp.ne.s32.totalorder %s2079_s0, %s1868_s22  ;;  %p1872_p1 = scmp.lt.u32.totalorder %s1868_s22, %s2079_s0 }
   0x4   :  { %p1874_p2 = pnand %p1872_p1, %p1869_p0 }
   0x6   :  { %1877 = shalt.err (!%p1874_p2)
}
   0x7   :  { %s1878_s27 = scalar_lea.vmem %s18_s19, 128  ;;  %p1883_p4 = scmp.lt.s32.totalorder %s18_s19, %s18_s19 }
   0x8   :  { %p1879_p3 = scmp.ne.s32.totalorder %s18_s19, %s1878_s27  ;;  %p1884_p5 = scmp.lt.s32.totalorder %s1878_s27, %s1878_s27 }
   0xa   :  { %p1885_p6 = por %p1884_p5, %p1883_p4 }
   0xc   :  { %p1886_p7 = pnand %p1885_p6, %p1879_p3 }
   0xe   :  { %1889 = shalt.err (!%p1886_p7)
}
   0xf   :  { %20 = dma.hbm_to_vmem [thread:$0]  %s2079_s0, 128, %s18_s19, [#allocation3]  }
  0x10   :  { %1890 = dma.done.wait [#allocation3], 128  }
  0x11   :  { %1891 = vsyncadd [#allocation3], 4294967168  ;;  %v44_v0 = vlaneseq  ;;  %v1893_v1 = vmov 1983009808   ;;  %v1894_v4 = vmov 1934713408  }
  0x12   :  { %v42_v2 = vunpack.c.l.s4 %v1893_v1  ;;  %v59_v5 = vunpack.c.l.s4 %v1894_v4  ;;  %v1895_v6 = vmov 0.0   ;;  %v1738_v10 = vld [vmem:[%s2082_s3] ss:$8 sps:$4 sm:$0xff]   ;;  %v1739_v11 = vld [vmem:[%s2082_s3 + $0x4] ss:$8 sps:$4 sm:$0xff]   ;;  %vm1896_vm0 = vmmov 0  }
  0x13   :  { %v45_v3 = vshrl.u32 %v44_v0, 7  ;;  %1678 = vmatprep.subr.mxu0 %v1895_v6  ;;  %1680 = vmatprep.mubr.msk.f32.mxu0 %vm1896_vm0, %v1895_v6  ;;  %v92_v17 = vcombine.low %v1895_v6, %v1895_v6  ;;  %s1897_s3 = smov 4   ;;  %s1898_s8 = smov 12   ;;  %vm86_vm1 = vcmask 31744   ;;  %vm88_vm2 = vcmask 64512   ;;  %v32_v37 = vld [vmem:[#allocation2] sm:$0xff] }
  0x14   :  { %v43_v7 = vunpack.c.0.s8 %v42_v2  ;;  %v60_v9 = vunpack.c.0.s8 %v59_v5  ;;  %s1899_s9 = smov 8   ;;  %vm90_vm3 = vcmask 97280   ;;  %vm138_vm4 = vcmask 1043456   ;;  %s1900_s10 = smov 120  }
  0x15   :  { %s1901_s11 = smov 124   ;;  %s1902_s12 = smov 116   ;;  %vm1363_vm5 = vcmask 130048   ;;  %vm1365_vm6 = vcmask 195584   ;;  %vm1367_vm7 = vcmask 261120   ;;  %vm1369_vm8 = vcmask 326656  }
  0x16   :  { %v1952_v8 = vsub.s32 %v43_v7, %v45_v3  ;;  %v1962_v14 = vsub.s32 %v60_v9, %v45_v3  ;;  %s1904_s16 = smov 48   ;;  %s1905_s17 = smov 24   ;;  %vm1371_vm9 = vcmask 392192   ;;  %vm1373_vm10 = vcmask 457728  }
  0x17   :  { %s1906_s18 = smov 32   ;;  %s1907_s19 = smov 40  }
  0x18   :  { %v47_v12 = vrot.slane %v1738_v10, %v1952_v8  ;;  %v55_v13 = vrot.slane %v1739_v11, %v1952_v8  ;;  %v99_v20 = vrot.slane %v92_v17, %v1952_v8  ;;  %s1908_s20 = smov 56  }
  0x1a   :  { %v56_v15 = vcombine.low %v47_v12, %v55_v13  ;;  %v57_v16 = vcombine.high %v47_v12, %v55_v13  ;;  %v100_v23 = vcombine.low %v99_v20, %v99_v20  ;;  %v101_v24 = vcombine.high %v99_v20, %v99_v20 }
  0x1c   :  { %v64_v18 = vrot.slane %v56_v15, %v1962_v14  ;;  %v71_v19 = vrot.slane %v57_v16, %v1962_v14  ;;  %v108_v25 = vrot.slane %v100_v23, %v1962_v14  ;;  %v115_v26 = vrot.slane %v101_v24, %v1962_v14 }
  0x1e   :  { %v72_v21 = vcombine.high %v64_v18, %v1895_v6  ;;  %v73_v22 = vcombine.high %v71_v19, %v1895_v6  ;;  %v117_v27 = vcombine.high %v108_v25, %v108_v25  ;;  %v118_v28 = vcombine.low %v115_v26, %v115_v26 }
  0x1f   :  { %v119_v29 = vcombine.high %v115_v26, %v115_v26  ;;  %v116_v32 = vcombine.low %v108_v25, %v108_v25 }
  0x20   :  { %75 = vrot.lane.b32.xlu0 %v72_v21, %s1897_s3  ;;  %83 = vrot.lane.b32.xlu1 %v73_v22, %s1898_s8 }
  0x24   :  { %79 = vrot.lane.b32.xlu0 %v71_v19, %s1899_s9  ;;  %121 = vrot.lane.b32.xlu1 %v117_v27, %s1897_s3 }
  0x28   :  { %125 = vrot.lane.b32.xlu0 %v118_v28, %s1899_s9  ;;  %129 = vrot.lane.b32.xlu1 %v119_v29, %s1898_s8 }
  0x92   :  { %v76_v30 = vpop.permute.xlu0 %75  ;;  %v84_v31 = vpop.permute.xlu1 %83 }
  0x93   :  { %v87_v33 = vsel %vm86_vm1, %v64_v18, %v76_v30 }
  0x96   :  { %v80_v34 = vpop.permute.xlu0 %79  ;;  %v122_v35 = vpop.permute.xlu1 %121 }
  0x97   :  { %v89_v36 = vsel %vm88_vm2, %v87_v33, %v80_v34  ;;  %v132_v39 = vsel %vm86_vm1, %v116_v32, %v122_v35 }
  0x98   :  { %v91_v38 = vsel %vm90_vm3, %v89_v36, %v84_v31 }
  0x99   :  { %1679 = vmatpush3.msk.msra.mxu0 %vm138_vm4, %v91_v38 }
  0x9a   :  { %1681 = vmatmul.mubr.msk.f32.vlgmr.msra.gmra.mrb[0].mxu0 %vm86_vm1, %v32_v37  ;;  %v126_v40 = vpop.permute.xlu0 %125  ;;  %v130_v41 = vpop.permute.xlu1 %129  ;;  %v33_v37 = vld [vmem:[%s2080_s1] sm:$0xff] }
  0x9b   :  { %v133_v42 = vsel %vm88_vm2, %v132_v39, %v126_v40  ;;  %1683 = vmatprep.subr.msk.mxu0 %vm86_vm1, %v33_v37  ;;  %1719 = vmatprep.subr.msk.mxu1 %vm86_vm1, %v33_v37 }
  0x9c   :  { %v134_v43 = vsel %vm90_vm3, %v133_v42, %v130_v41  ;;  %1720 = vmatpush3.xpose.msk.msra.mxu1 %vm86_vm1, %v33_v37 }
  0xa0   :  { %1684 = vmatpush3.xpose.msk.msra.mxu0 %vm86_vm1, %v33_v37 }
 0x16d   :  { %v208_v44 = vpop.f32.mrb[0].mxu0 }
 0x16e   :  { %v209_v45 = vadd.f32 %v208_v44, %v134_v43  ;;  %v1682_v46 = vpop.f32.mrb[1].mxu0 }
 0x170   :  { %216 = vrot.lane.b32.xlu1 %v209_v45, %s1900_s10  ;;  %213 = vrot.lane.b32.xlu0 %v209_v45, %s1901_s11 }
 0x174   :  { %219 = vrot.lane.b32.xlu0 %v209_v45, %s1902_s12 }
 0x1e2   :  { %v217_v47 = vpop.permute.xlu1 %216  ;;  %v214_v48 = vpop.permute.xlu0 %213 }
 0x1e3   :  { %v222_v49 = vcombine.low %v209_v45, %v217_v47  ;;  %v223_v50 = vcombine.high %v209_v45, %v217_v47 }
 0x1e5   :  { %v230_v54 = vrot.slane %v222_v49, %v1952_v8  ;;  %v237_v55 = vrot.slane %v223_v50, %v1952_v8 }
 0x1e6   :  { %v220_v51 = vpop.permute.xlu0 %219 }
 0x1e7   :  { %v238_v52 = vcombine.low %v214_v48, %v220_v51  ;;  %v239_v53 = vcombine.high %v214_v48, %v220_v51 }
 0x1e9   :  { %v246_v56 = vrot.slane %v238_v52, %v1952_v8  ;;  %v253_v57 = vrot.slane %v239_v53, %v1952_v8 }
 0x1eb   :  { %v254_v58 = vcombine.low %v230_v54, %v246_v56  ;;  %v255_v59 = vcombine.high %v230_v54, %v246_v56  ;;  %v270_v60 = vcombine.low %v237_v55, %v253_v57  ;;  %v271_v61 = vcombine.high %v237_v55, %v253_v57 }
 0x1ed   :  { %v262_v62 = vrot.slane %v254_v58, %v1962_v14  ;;  %v269_v63 = vrot.slane %v255_v59, %v1962_v14  ;;  %v278_v0 = vrot.slane %v270_v60, %v1962_v14  ;;  %v285_v3 = vrot.slane %v271_v61, %v1962_v14  ;;  %v34_v61 = vld [vmem:[%s2081_s2] sm:$0xff]  ;;  %s1903_s2 = smov 16  }
 0x1ee   :  { %1691 = vmatprep.subr.msk.mxu0 %vm86_vm1, %v34_v61 }
 0x1ef   :  { %v286_v1 = vcombine.high %v262_v62, %v1895_v6  ;;  %v287_v2 = vcombine.high %v269_v63, %v1895_v6  ;;  %v1599_v4 = vmul.f32 -1.442695, %v262_v62  ;;  %v1601_v5 = vmul.f32 -1.442695, %v269_v63 }
 0x1f0   :  { %v1603_v9 = vmul.f32 -1.442695, %v278_v0  ;;  %v288_v11 = vcombine.high %v278_v0, %v1895_v6  ;;  %v1605_v12 = vmul.f32 -1.442695, %v285_v3  ;;  %v289_v13 = vcombine.high %v285_v3, %v1895_v6 }
 0x1f1   :  { %v1600_v7 = vmul.f32 -1.442695, %v286_v1  ;;  %1740 = vpow2.f32 %v1599_v4  ;;  %v1602_v10 = vmul.f32 -1.442695, %v287_v2 }
 0x1f2   :  { %v1604_v15 = vmul.f32 -1.442695, %v288_v11  ;;  %v1606_v17 = vmul.f32 -1.442695, %v289_v13 }
 0x1f3   :  { %1742 = vpow2.f32 %v1600_v7 }
 0x1f4   :  { %1744 = vpow2.f32 %v1601_v5 }
 0x1f5   :  { %1746 = vpow2.f32 %v1603_v9 }
 0x1f6   :  { %1748 = vpow2.f32 %v1602_v10 }
 0x1f7   :  { %1750 = vpow2.f32 %v1605_v12 }
 0x1f8   :  { %1752 = vpow2.f32 %v1604_v15 }
 0x1fb   :  { %v1741_v16 = vpop.eup %1740 }
 0x1fc   :  { %v314_v19 = vadd.f32 1.0, %v1741_v16 }
 0x1fd   :  { %v1743_v18 = vpop.eup %1742 }
 0x1fe   :  { %v1745_v20 = vpop.eup %1744  ;;  %1754 = vrcp.f32 %v314_v19  ;;  %v315_v25 = vadd.f32 1.0, %v1743_v18 }
 0x1ff   :  { %v316_v21 = vadd.f32 1.0, %v1745_v20  ;;  %v1747_v22 = vpop.eup %1746  ;;  %1756 = vpow2.f32 %v1606_v17 }
 0x200   :  { %v1749_v23 = vpop.eup %1748  ;;  %v318_v24 = vadd.f32 1.0, %v1747_v22 }
 0x201   :  { %1758 = vrcp.f32 %v316_v21  ;;  %v1751_v26 = vpop.eup %1750  ;;  %v317_v6 = vadd.f32 1.0, %v1749_v23 }
 0x202   :  { %1760 = vrcp.f32 %v318_v24  ;;  %v320_v27 = vadd.f32 1.0, %v1751_v26  ;;  %v1753_v28 = vpop.eup %1752 }
 0x203   :  { %1762 = vrcp.f32 %v315_v25  ;;  %v319_v30 = vadd.f32 1.0, %v1753_v28 }
 0x204   :  { %1764 = vrcp.f32 %v320_v27 }
 0x205   :  { %1766 = vrcp.f32 %v317_v6 }
 0x206   :  { %1768 = vrcp.f32 %v319_v30 }
 0x208   :  { %v1755_v29 = vpop.eup %1754 }
 0x209   :  { %v1757_v31 = vpop.eup %1756  ;;  %338 = vxpose.xlu1.b32.start.end [1/1] (short) (narrow) %v1755_v29, 8 }
 0x20a   :  { %v321_v34 = vadd.f32 1.0, %v1757_v31 }
 0x20b   :  { %v1759_v32 = vpop.eup %1758 }
 0x20c   :  { %402 = vxpose.xlu0.b32.start.end [1/1] (short) (narrow) %v1759_v32, 8  ;;  %v1761_v33 = vpop.eup %1760  ;;  %1770 = vrcp.f32 %v321_v34 }
 0x20d   :  { %466 = vxpose.xlu1.b32.start.end [1/1] (short) (narrow) %v1761_v33, 8  ;;  %v1763_v35 = vpop.eup %1762 }
 0x20e   :  { %v1765_v36 = vpop.eup %1764 }
 0x20f   :  { %v1767_v38 = vpop.eup %1766 }
 0x210   :  { %370 = vxpose.xlu0.b32.start.end [1/1] (short) (narrow) %v1763_v35, 8  ;;  %v1769_v39 = vpop.eup %1768 }
 0x211   :  { %530 = vxpose.xlu1.b32.start.end [1/1] (short) (narrow) %v1765_v36, 8 }
 0x214   :  { %434 = vxpose.xlu0.b32.start.end [1/1] (short) (narrow) %v1767_v38, 8 }
 0x216   :  { %v1771_v40 = vpop.eup %1770 }
 0x218   :  { %498 = vxpose.xlu0.b32.start.end [1/1] (short) (narrow) %v1769_v39, 8 }
 0x21c   :  { %562 = vxpose.xlu0.b32.start.end [1/1] (short) (narrow) %v1771_v40, 8 }
 0x289   :  { %v354_v42 = vpop.trf.xlu1 }
 0x28c   :  { %v418_v41 = vpop.trf.xlu0 }
 0x28d   :  { %v482_v46 = vpop.trf.xlu1 }
 0x290   :  { %v386_v43 = vpop.trf.xlu0 }
 0x291   :  { %v602_v44 = vcombine.low %v354_v42, %v386_v43  ;;  %v546_v50 = vpop.trf.xlu1 }
 0x293   :  { %1685 = vmatprep.mubr.msk.f32.mxu0 %vm86_vm1, %v602_v44 }
 0x294   :  { %v450_v45 = vpop.trf.xlu0 }
 0x295   :  { %v603_v47 = vcombine.low %v418_v41, %v450_v45 }
 0x297   :  { %1686 = vmatmul.mubr.msk.f32.vlgmr.msra.gmra.mrb[2].mxu0 %vm86_vm1, %v603_v47 }
 0x298   :  { %v514_v48 = vpop.trf.xlu0  ;;  %1692 = vmatpush3.xpose.msk.msra.mxu0 %vm86_vm1, %v34_v61 }
 0x299   :  { %v604_v49 = vcombine.low %v482_v46, %v514_v48 }
 0x29b   :  { %1688 = vmatprep.mubr.msk.f32.mxu1 %vm86_vm1, %v604_v49 }
 0x29c   :  { %v578_v51 = vpop.trf.xlu0 }
 0x29d   :  { %v605_v52 = vcombine.low %v546_v50, %v578_v51 }
 0x29f   :  { %1689 = vmatmul.mubr.msk.f32.vlgmr.msra.gmra.mrb[0].mxu1 %vm86_vm1, %v605_v52 }
 0x36a   :  { %v1687_v53 = vpop.f32.mrb[2].mxu0 }
 0x36b   :  { %v683_v54 = vpop.f32.mrb[3].mxu0  ;;  %v707_v56 = vcombine.high %v1687_v53, %v1687_v53 }
 0x36c   :  { %714 = vxpose.xlu1.b32.start.end [1/1] (short) (narrow) %v683_v54, 8  ;;  %v706_v55 = vcombine.high %v683_v54, %v683_v54 }
 0x36e   :  { %746 = vxpose.xlu0.b32.start.end [1/1] (short) (narrow) %v706_v55, 8 }
 0x370   :  { %778 = vxpose.xlu1.b32.start.end [1/1] (short) (narrow) %v1687_v53, 8 }
 0x372   :  { %v1690_v57 = vpop.f32.mrb[0].mxu1  ;;  %810 = vxpose.xlu0.b32.start.end [1/1] (short) (narrow) %v707_v56, 8 }
 0x373   :  { %v693_v58 = vpop.f32.mrb[1].mxu1  ;;  %v709_v60 = vcombine.high %v1690_v57, %v1690_v57 }
 0x374   :  { %842 = vxpose.xlu1.b32.start.end [1/1] (short) (narrow) %v693_v58, 8  ;;  %v708_v59 = vcombine.high %v693_v58, %v693_v58 }
 0x376   :  { %874 = vxpose.xlu0.b32.start.end [1/1] (short) (narrow) %v708_v59, 8 }
 0x378   :  { %906 = vxpose.xlu1.b32.start.end [1/1] (short) (narrow) %v1690_v57, 8 }
 0x37a   :  { %938 = vxpose.xlu0.b32.start.end [1/1] (short) (narrow) %v709_v60, 8 }
 0x3ec   :  { %v730_v62 = vpop.trf.xlu1 }
 0x3ed   :  { %v1612_v63 = vmul.f32 -1.442695, %v730_v62 }
 0x3ee   :  { %v762_v0 = vpop.trf.xlu0 }
 0x3ef   :  { %1772 = vpow2.f32 %v1612_v63  ;;  %v1613_v1 = vmul.f32 -1.442695, %v762_v0 }
 0x3f0   :  { %v794_v2 = vpop.trf.xlu1 }
 0x3f1   :  { %1774 = vpow2.f32 %v1613_v1  ;;  %v1614_v3 = vmul.f32 -1.442695, %v794_v2 }
 0x3f2   :  { %v826_v4 = vpop.trf.xlu0 }
 0x3f3   :  { %1776 = vpow2.f32 %v1614_v3  ;;  %v1615_v5 = vmul.f32 -1.442695, %v826_v4 }
 0x3f4   :  { %v858_v7 = vpop.trf.xlu1 }
 0x3f5   :  { %1778 = vpow2.f32 %v1615_v5  ;;  %v1616_v9 = vmul.f32 -1.442695, %v858_v7 }
 0x3f6   :  { %v890_v10 = vpop.trf.xlu0 }
 0x3f7   :  { %1780 = vpow2.f32 %v1616_v9  ;;  %v1617_v11 = vmul.f32 -1.442695, %v890_v10 }
 0x3f8   :  { %v922_v12 = vpop.trf.xlu1 }
 0x3f9   :  { %v1773_v13 = vpop.eup %1772  ;;  %1782 = vpow2.f32 %v1617_v11  ;;  %v1618_v15 = vmul.f32 -1.442695, %v922_v12 }
 0x3fa   :  { %v994_v16 = vadd.f32 1.0, %v1773_v13  ;;  %v954_v17 = vpop.trf.xlu0 }
 0x3fb   :  { %v1775_v18 = vpop.eup %1774  ;;  %1784 = vpow2.f32 %v1618_v15  ;;  %v1619_v19 = vmul.f32 -1.442695, %v954_v17 }
 0x3fc   :  { %1786 = vrcp.f32 %v994_v16  ;;  %v995_v20 = vadd.f32 1.0, %v1775_v18 }
 0x3fd   :  { %v1777_v21 = vpop.eup %1776  ;;  %1788 = vpow2.f32 %v1619_v19 }
 0x3fe   :  { %1790 = vrcp.f32 %v995_v20  ;;  %v996_v22 = vadd.f32 1.0, %v1777_v21 }
 0x3ff   :  { %v1779_v23 = vpop.eup %1778 }
 0x400   :  { %1792 = vrcp.f32 %v996_v22  ;;  %v997_v24 = vadd.f32 1.0, %v1779_v23 }
 0x401   :  { %v1781_v25 = vpop.eup %1780 }
 0x402   :  { %1794 = vrcp.f32 %v997_v24  ;;  %v998_v26 = vadd.f32 1.0, %v1781_v25 }
 0x403   :  { %v1783_v27 = vpop.eup %1782 }
 0x404   :  { %1796 = vrcp.f32 %v998_v26  ;;  %v999_v6 = vadd.f32 1.0, %v1783_v27 }
 0x405   :  { %v1785_v28 = vpop.eup %1784 }
 0x406   :  { %v1787_v29 = vpop.eup %1786  ;;  %1798 = vrcp.f32 %v999_v6  ;;  %v1000_v30 = vadd.f32 1.0, %v1785_v28 }
 0x407   :  { %v1789_v31 = vpop.eup %1788  ;;  %1693 = vmatprep.mubr.msk.f32.mxu0 %vm86_vm1, %v1787_v29 }
 0x408   :  { %v1791_v32 = vpop.eup %1790  ;;  %1800 = vrcp.f32 %v1000_v30  ;;  %v1001_v33 = vadd.f32 1.0, %v1789_v31 }
 0x409   :  { %1694 = vmatmul.mubr.msk.f32.vlgmr.msra.gmra.mrb[4].mxu0 %vm86_vm1, %v1791_v32 }
 0x40a   :  { %v1793_v34 = vpop.eup %1792  ;;  %1802 = vrcp.f32 %v1001_v33 }
 0x40b   :  { %1696 = vmatprep.mubr.msk.f32.mxu0 %vm86_vm1, %v1793_v34 }
 0x40c   :  { %v1795_v35 = vpop.eup %1794 }
 0x40d   :  { %1697 = vmatmul.mubr.msk.f32.gmra.mrb[6].mxu0 %vm86_vm1, %v1795_v35 }
 0x40e   :  { %v1797_v36 = vpop.eup %1796 }
 0x40f   :  { %1699 = vmatprep.mubr.msk.f32.mxu0 %vm86_vm1, %v1797_v36 }
 0x410   :  { %v1799_v37 = vpop.eup %1798 }
 0x411   :  { %1700 = vmatmul.mubr.msk.f32.gmra.mrb[8].mxu0 %vm86_vm1, %v1799_v37 }
 0x412   :  { %v1801_v38 = vpop.eup %1800 }
 0x413   :  { %1702 = vmatprep.mubr.msk.f32.mxu0 %vm86_vm1, %v1801_v38 }
 0x414   :  { %v1803_v39 = vpop.eup %1802 }
 0x415   :  { %1703 = vmatmul.mubr.msk.f32.gmra.mrb[10].mxu0 %vm86_vm1, %v1803_v39 }
 0x4dc   :  { %v1695_v40 = vpop.f32.mrb[4].mxu0 }
 0x4dd   :  { %v1630_v41 = vmul.f32 -1.442695, %v1695_v40  ;;  %v1111_v42 = vpop.f32.mrb[5].mxu0 }
 0x4de   :  { %v1629_v43 = vmul.f32 -1.442695, %v1111_v42 }
 0x4df   :  { %1804 = vpow2.f32 %v1630_v41 }
 0x4e0   :  { %1806 = vpow2.f32 %v1629_v43  ;;  %v1698_v44 = vpop.f32.mrb[6].mxu0 }
 0x4e1   :  { %v1632_v45 = vmul.f32 -1.442695, %v1698_v44  ;;  %v1121_v46 = vpop.f32.mrb[7].mxu0 }
 0x4e2   :  { %v1631_v47 = vmul.f32 -1.442695, %v1121_v46 }
 0x4e3   :  { %1808 = vpow2.f32 %v1632_v45 }
 0x4e4   :  { %1810 = vpow2.f32 %v1631_v47  ;;  %v1701_v48 = vpop.f32.mrb[8].mxu0 }
 0x4e5   :  { %v1634_v49 = vmul.f32 -1.442695, %v1701_v48  ;;  %v1131_v50 = vpop.f32.mrb[9].mxu0 }
 0x4e6   :  { %v1633_v51 = vmul.f32 -1.442695, %v1131_v50 }
 0x4e7   :  { %1812 = vpow2.f32 %v1634_v49 }
 0x4e8   :  { %v1704_v52 = vpop.f32.mrb[10].mxu0  ;;  %1814 = vpow2.f32 %v1633_v51 }
 0x4e9   :  { %v1805_v53 = vpop.eup %1804  ;;  %v1636_v54 = vmul.f32 -1.442695, %v1704_v52  ;;  %v1141_v55 = vpop.f32.mrb[11].mxu0 }
 0x4ea   :  { %v1807_v56 = vpop.eup %1806  ;;  %v1175_v57 = vadd.f32 1.0, %v1805_v53  ;;  %v1635_v58 = vmul.f32 -1.442695, %v1141_v55 }
 0x4eb   :  { %v1174_v59 = vadd.f32 1.0, %v1807_v56  ;;  %1816 = vpow2.f32 %v1636_v54 }
 0x4ec   :  { %1818 = vrcp.f32 %v1175_v57 }
 0x4ed   :  { %v1809_v60 = vpop.eup %1808  ;;  %1820 = vpow2.f32 %v1635_v58 }
 0x4ee   :  { %v1811_v61 = vpop.eup %1810  ;;  %v1177_v62 = vadd.f32 1.0, %v1809_v60  ;;  %1822 = vrcp.f32 %v1174_v59 }
 0x4ef   :  { %v1176_v63 = vadd.f32 1.0, %v1811_v61 }
 0x4f0   :  { %1824 = vrcp.f32 %v1177_v62 }
 0x4f1   :  { %v1813_v0 = vpop.eup %1812  ;;  %1826 = vrcp.f32 %v1176_v63 }
 0x4f2   :  { %v1815_v1 = vpop.eup %1814  ;;  %v1179_v2 = vadd.f32 1.0, %v1813_v0 }
 0x4f3   :  { %v1178_v4 = vadd.f32 1.0, %v1815_v1 }
 0x4f4   :  { %1828 = vrcp.f32 %v1179_v2 }
 0x4f5   :  { %v1817_v3 = vpop.eup %1816 }
 0x4f6   :  { %v1181_v5 = vadd.f32 1.0, %v1817_v3  ;;  %v1819_v7 = vpop.eup %1818 }
 0x4f7   :  { %v1821_v9 = vpop.eup %1820 }
 0x4f8   :  { %1830 = vrcp.f32 %v1181_v5  ;;  %v1823_v10 = vpop.eup %1822  ;;  %v1180_v11 = vadd.f32 1.0, %v1821_v9 }
 0x4f9   :  { %1832 = vrcp.f32 %v1178_v4 }
 0x4fa   :  { %v1825_v12 = vpop.eup %1824  ;;  %1834 = vrcp.f32 %v1180_v11 }
 0x4fb   :  { %v1827_v13 = vpop.eup %1826  ;;  %v1214_v15 = vcombine.low %v1819_v7, %v1825_v12  ;;  %v1215_v16 = vcombine.high %v1819_v7, %v1825_v12  ;;  %v39_v7 = vld [vmem:[%s2083_s4] sm:$0xff] }
 0x4fc   :  { %v1198_v17 = vcombine.low %v1823_v10, %v1827_v13  ;;  %v1199_v18 = vcombine.high %v1823_v10, %v1827_v13  ;;  %1705 = vmatprep.subr.mxu1 %v39_v7 }
 0x4fd   :  { %v1222_v19 = vrot.slane %v1214_v15, %v1952_v8  ;;  %v1229_v20 = vrot.slane %v1215_v16, %v1952_v8  ;;  %1706 = vmatpush3.msra.mxu1 %v39_v7 }
 0x4fe   :  { %v1206_v21 = vrot.slane %v1198_v17, %v1952_v8  ;;  %v1213_v22 = vrot.slane %v1199_v18, %v1952_v8  ;;  %v1829_v27 = vpop.eup %1828 }
 0x500   :  { %v1263_v23 = vcombine.high %v1206_v21, %v1222_v19  ;;  %v1262_v24 = vcombine.low %v1206_v21, %v1222_v19  ;;  %v1279_v25 = vcombine.high %v1213_v22, %v1229_v20  ;;  %v1278_v26 = vcombine.low %v1213_v22, %v1229_v20 }
 0x502   :  { %v1831_v6 = vpop.eup %1830  ;;  %v1277_v42 = vrot.slane %v1263_v23, %v1962_v14  ;;  %v1270_v43 = vrot.slane %v1262_v24, %v1962_v14  ;;  %v1293_v44 = vrot.slane %v1279_v25, %v1962_v14 }
 0x503   :  { %v1246_v28 = vcombine.low %v1829_v27, %v1831_v6  ;;  %v1247_v29 = vcombine.high %v1829_v27, %v1831_v6  ;;  %v1833_v30 = vpop.eup %1832 }
 0x504   :  { %v1835_v31 = vpop.eup %1834 }
 0x505   :  { %v1230_v32 = vcombine.low %v1833_v30, %v1835_v31  ;;  %v1254_v33 = vrot.slane %v1246_v28, %v1952_v8  ;;  %v1231_v34 = vcombine.high %v1833_v30, %v1835_v31  ;;  %v1261_v35 = vrot.slane %v1247_v29, %v1952_v8 }
 0x507   :  { %v1238_v36 = vrot.slane %v1230_v32, %v1952_v8  ;;  %v1245_v37 = vrot.slane %v1231_v34, %v1952_v8  ;;  %v1286_v8 = vrot.slane %v1278_v26, %v1962_v14 }
 0x509   :  { %v1295_v38 = vcombine.high %v1238_v36, %v1254_v33  ;;  %v1294_v39 = vcombine.low %v1238_v36, %v1254_v33  ;;  %v1311_v40 = vcombine.high %v1245_v37, %v1261_v35  ;;  %v1310_v41 = vcombine.low %v1245_v37, %v1261_v35 }
 0x50b   :  { %v1309_v45 = vrot.slane %v1295_v38, %v1962_v14  ;;  %v1302_v46 = vrot.slane %v1294_v39, %v1962_v14  ;;  %v1325_v47 = vrot.slane %v1311_v40, %v1962_v14  ;;  %v1318_v48 = vrot.slane %v1310_v41, %v1962_v14 }
 0x50d   :  { %v1328_v49 = vcombine.low %v1277_v42, %v1309_v45  ;;  %v1327_v50 = vcombine.high %v1270_v43, %v1302_v46  ;;  %v1332_v51 = vcombine.low %v1293_v44, %v1325_v47  ;;  %v1329_v52 = vcombine.high %v1277_v42, %v1309_v45 }
 0x50e   :  { %v1330_v53 = vcombine.low %v1286_v8, %v1318_v48  ;;  %v1331_v54 = vcombine.high %v1286_v8, %v1318_v48  ;;  %v1333_v55 = vcombine.high %v1293_v44, %v1325_v47  ;;  %v1326_v56 = vcombine.low %v1270_v43, %v1302_v46 }
 0x50f   :  { %1339 = vrot.lane.b32.xlu0 %v1328_v49, %s1903_s2  ;;  %1335 = vrot.lane.b32.xlu1 %v1327_v50, %s1899_s9 }
 0x513   :  { %1355 = vrot.lane.b32.xlu0 %v1332_v51, %s1904_s16  ;;  %1343 = vrot.lane.b32.xlu1 %v1329_v52, %s1905_s17 }
 0x517   :  { %1347 = vrot.lane.b32.xlu1 %v1330_v53, %s1906_s18 }
 0x51b   :  { %1351 = vrot.lane.b32.xlu1 %v1331_v54, %s1907_s19 }
 0x51f   :  { %1359 = vrot.lane.b32.xlu1 %v1333_v55, %s1908_s20 }
 0x581   :  { %v1336_v14 = vpop.permute.xlu1 %1335  ;;  %v1340_v58 = vpop.permute.xlu0 %1339 }
 0x582   :  { %v1362_v59 = vsel %vm88_vm2, %v1326_v56, %v1336_v14 }
 0x583   :  { %v1364_v61 = vsel %vm1363_vm5, %v1362_v59, %v1340_v58 }
 0x585   :  { %v1344_v57 = vpop.permute.xlu1 %1343  ;;  %v1356_v2 = vpop.permute.xlu0 %1355 }
 0x586   :  { %v1366_v62 = vsel %vm1365_vm6, %v1364_v61, %v1344_v57 }
 0x589   :  { %v1348_v60 = vpop.permute.xlu1 %1347 }
 0x58a   :  { %v1368_v63 = vsel %vm1367_vm7, %v1366_v62, %v1348_v60 }
 0x58d   :  { %v1352_v0 = vpop.permute.xlu1 %1351 }
 0x58e   :  { %v1370_v1 = vsel %vm1369_vm8, %v1368_v63, %v1352_v0 }
 0x58f   :  { %v1372_v4 = vsel %vm1371_vm9, %v1370_v1, %v1356_v2 }
 0x591   :  { %v1360_v3 = vpop.permute.xlu1 %1359 }
 0x592   :  { %v1374_v5 = vsel %vm1373_vm10, %v1372_v4, %v1360_v3 }
 0x593   :  { %1375 = vxpose.xlu0.b32.start.end [1/1] (short) (narrow) %v1374_v5, 64 }
 0x613   :  { %v1391_v9 = vpop.trf.xlu0 }
 0x614   :  { %1707 = vmatprep.mubr.msk.f32.mxu1 %vm88_vm2, %v1391_v9 }
 0x617   :  { %v1392_v10 = vpop.trf.xlu0 }
 0x618   :  { %1708 = vmatmul.mubr.msk.f32.vlgmr.msra.gmra.mrb[2].mxu1 %vm88_vm2, %v1392_v10 }
 0x61b   :  { %v1393_v11 = vpop.trf.xlu0 }
 0x61c   :  { %1710 = vmatprep.mubr.msk.f32.mxu1 %vm88_vm2, %v1393_v11 }
 0x61f   :  { %v1394_v12 = vpop.trf.xlu0 }
 0x620   :  { %1711 = vmatmul.mubr.msk.f32.gmra.mrb[4].mxu1 %vm88_vm2, %v1394_v12 }
 0x623   :  { %v1395_v13 = vpop.trf.xlu0 }
 0x624   :  { %1713 = vmatprep.mubr.msk.f32.mxu1 %vm88_vm2, %v1395_v13 }
 0x627   :  { %v1396_v15 = vpop.trf.xlu0 }
 0x628   :  { %1714 = vmatmul.mubr.msk.f32.gmra.mrb[6].mxu1 %vm88_vm2, %v1396_v15 }
 0x62b   :  { %v1397_v16 = vpop.trf.xlu0 }
 0x62c   :  { %1716 = vmatprep.mubr.msk.f32.mxu1 %vm88_vm2, %v1397_v16 }
 0x62f   :  { %v1398_v17 = vpop.trf.xlu0 }
 0x630   :  { %1717 = vmatmul.mubr.msk.f32.gmra.mrb[8].mxu1 %vm88_vm2, %v1398_v17 }
 0x6eb   :  { %v1709_v18 = vpop.f32.mrb[2].mxu1 }
 0x6ec   :  { %v1646_v19 = vmul.f32 -1.442695, %v1709_v18  ;;  %v1497_v20 = vpop.f32.mrb[3].mxu1 }
 0x6ed   :  { %v1645_v21 = vmul.f32 -1.442695, %v1497_v20 }
 0x6ee   :  { %1836 = vpow2.f32 %v1646_v19 }
 0x6ef   :  { %1838 = vpow2.f32 %v1645_v21 }
 0x6f3   :  { %v1712_v22 = vpop.f32.mrb[4].mxu1 }
 0x6f4   :  { %v1648_v23 = vmul.f32 -1.442695, %v1712_v22  ;;  %v1507_v24 = vpop.f32.mrb[5].mxu1 }
 0x6f5   :  { %v1647_v25 = vmul.f32 -1.442695, %v1507_v24 }
 0x6f6   :  { %1840 = vpow2.f32 %v1648_v23 }
 0x6f7   :  { %1842 = vpow2.f32 %v1647_v25 }
 0x6f8   :  { %v1837_v26 = vpop.eup %1836 }
 0x6f9   :  { %v1839_v27 = vpop.eup %1838  ;;  %v1561_v6 = vadd.f32 1.0, %v1837_v26 }
 0x6fa   :  { %v1560_v28 = vadd.f32 1.0, %v1839_v27 }
 0x6fb   :  { %1844 = vrcp.f32 %v1561_v6  ;;  %v1715_v29 = vpop.f32.mrb[6].mxu1 }
 0x6fc   :  { %1846 = vrcp.f32 %v1560_v28  ;;  %v1650_v30 = vmul.f32 -1.442695, %v1715_v29  ;;  %v1517_v31 = vpop.f32.mrb[7].mxu1 }
 0x6fd   :  { %v1649_v32 = vmul.f32 -1.442695, %v1517_v31 }
 0x6fe   :  { %1848 = vpow2.f32 %v1650_v30 }
 0x6ff   :  { %1850 = vpow2.f32 %v1649_v32 }
 0x700   :  { %v1841_v33 = vpop.eup %1840 }
 0x701   :  { %v1843_v34 = vpop.eup %1842  ;;  %v1563_v35 = vadd.f32 1.0, %v1841_v33 }
 0x702   :  { %v1562_v36 = vadd.f32 1.0, %v1843_v34 }
 0x703   :  { %1852 = vrcp.f32 %v1563_v35  ;;  %v1718_v37 = vpop.f32.mrb[8].mxu1 }
 0x704   :  { %1854 = vrcp.f32 %v1562_v36  ;;  %v1652_v38 = vmul.f32 -1.442695, %v1718_v37  ;;  %v1527_v39 = vpop.f32.mrb[9].mxu1 }
 0x705   :  { %v1845_v40 = vpop.eup %1844  ;;  %v1651_v41 = vmul.f32 -1.442695, %v1527_v39 }
 0x706   :  { %v1847_v42 = vpop.eup %1846  ;;  %1585 = vst.msk [vmem:[%s2084_s5 + $0x8] sm:$0xff] %vm1363_vm5, %v1845_v40  ;;  %1856 = vpow2.f32 %v1652_v38 }
 0x707   :  { %1584 = vst.msk [vmem:[%s2084_s5] sm:$0xff] %vm1363_vm5, %v1847_v42  ;;  %1858 = vpow2.f32 %v1651_v41 }
 0x708   :  { %v1849_v43 = vpop.eup %1848 }
 0x709   :  { %v1851_v44 = vpop.eup %1850  ;;  %v1565_v45 = vadd.f32 1.0, %v1849_v43 }
 0x70a   :  { %v1564_v46 = vadd.f32 1.0, %v1851_v44 }
 0x70b   :  { %1860 = vrcp.f32 %v1565_v45 }
 0x70c   :  { %1862 = vrcp.f32 %v1564_v46 }
 0x70d   :  { %v1853_v47 = vpop.eup %1852 }
 0x70e   :  { %v1855_v48 = vpop.eup %1854  ;;  %1587 = vst.msk [vmem:[%s2084_s5 + $0x18] sm:$0xff] %vm1363_vm5, %v1853_v47 }
 0x70f   :  { %1586 = vst.msk [vmem:[%s2084_s5 + $0x10] sm:$0xff] %vm1363_vm5, %v1855_v48 }
 0x710   :  { %v1857_v8 = vpop.eup %1856 }
 0x711   :  { %v1859_v49 = vpop.eup %1858  ;;  %v1567_v50 = vadd.f32 1.0, %v1857_v8 }
 0x712   :  { %v1566_v51 = vadd.f32 1.0, %v1859_v49 }
 0x713   :  { %1864 = vrcp.f32 %v1567_v50 }
 0x714   :  { %1866 = vrcp.f32 %v1566_v51 }
 0x715   :  { %v1861_v52 = vpop.eup %1860 }
 0x716   :  { %v1863_v53 = vpop.eup %1862  ;;  %1589 = vst.msk [vmem:[%s2084_s5 + $0x28] sm:$0xff] %vm1363_vm5, %v1861_v52 }
 0x717   :  { %1588 = vst.msk [vmem:[%s2084_s5 + $0x20] sm:$0xff] %vm1363_vm5, %v1863_v53 }
 0x71d   :  { %v1865_v54 = vpop.eup %1864 }
 0x71e   :  { %v1867_v55 = vpop.eup %1866  ;;  %1591 = vst.msk [vmem:[%s2084_s5 + $0x38] sm:$0xff] %vm1363_vm5, %v1865_v54 }
 0x71f   :  { %1590 = vst.msk [vmem:[%s2084_s5 + $0x30] sm:$0xff] %vm1363_vm5, %v1867_v55 }
 0x720   :  { %1596 = vsyncpa [#allocation3], 1 }

</bundles_post_ra>
